<compile_context>
chip_gen: v6e
topology: v6e:2x2x1
jax: 0.10.0
libtpu: 0.0.40
codegen_flags: <defaults>
</compile_context>

<pallas_src>
import functools

import jax
import jax.numpy as jnp
from jax.experimental import pallas as pl
from jax.experimental.pallas import tpu as pltpu


def _round_up(v, m):
    return (v + m - 1) // m * m


def _pick_tile(n):
    """Largest adj tile in {512,256,128} whose extra padding stays <=12.5%/axis."""
    base = _round_up(n, 128)
    for t in (512, 256):
        if base >= t and _round_up(n, t) - base <= base // 8:
            return t, _round_up(n, t)
    return 128, base


def _graph_conv_kernel(adj_ref, x_ref, w_ref, b_ref, o_ref, acc_ref, *, tk):
    # adj_ref: (TM, TK) streamed tile     x_ref: (N_p, Cin_p) per-batch resident slab
    # w_ref:   (Cin_p, Cout_p) resident   b_ref: (1, Cout_p) f32
    # o_ref:   (TM, Cout_p)               acc_ref: (TM, Cin_p) f32 scratch
    k = pl.program_id(2)

    @pl.when(k == 0)
    def _init():
        acc_ref[...] = jnp.zeros_like(acc_ref)

    # Hot loop: neighborhood aggregation on the MXU, f32 accumulation.
    # x[b] already sits in VMEM; slice the contraction window instead of
    # re-streaming it from HBM for every row-tile.
    x_tile = x_ref[pl.ds(pl.multiple_of(k * tk, tk), tk), :]
    acc_ref[...] += jnp.dot(adj_ref[...], x_tile,
                            preferred_element_type=jnp.float32)

    @pl.when(k == pl.num_programs(2) - 1)
    def _epilogue():
        # Projection in the streaming dtype (bf16 operands by default; f32 only
        # on the debug path), f32 accumulate, bias add in f32, one lane-dense
        # store.
        y = jnp.dot(acc_ref[...].astype(w_ref.dtype), w_ref[...],
                    preferred_element_type=jnp.float32)
        y = y + b_ref[...]
        o_ref[...] = y.astype(o_ref.dtype)


def graph_conv(x, adj, weight, bias, *, compute_dtype=jnp.bfloat16):
    """x: (B, N, Cin), adj: (B, N, N), weight: (Cout, Cin), bias: (Cout,).

    compute_dtype: MXU streaming dtype for adj / x / W (accumulation is always
    f32).  Default bf16 halves the dominant adj HBM stream; pass jnp.float32
    for a near-bit-accurate debug/reference path.
    """
    B, N, Cin = x.shape
    Cout, Cin_w = weight.shape
    assert Cin_w == Cin

    out_dtype = x.dtype
    cdtype = jnp.dtype(compute_dtype)

    Cin_p = _round_up(Cin, 128)
    Cout_p = _round_up(Cout, 128)
    tile, N_p = _pick_tile(N)
    TM = TK = tile

    def _prep(a, pads, dt):
        # Skip the pad copy entirely when the shape is already aligned, and the
        # cast when the dtype already matches (both are full passes over HBM).
        if any(lo or hi for lo, hi in pads):
            a = jnp.pad(a, pads)
        return a.astype(dt) if a.dtype != dt else a

    adj_p = _prep(adj, ((0, 0), (0, N_p - N), (0, N_p - N)), cdtype)
    x_p = _prep(x, ((0, 0), (0, N_p - N), (0, Cin_p - Cin)), cdtype)
    w_t = _prep(weight.T, ((0, Cin_p - Cin), (0, Cout_p - Cout)), cdtype)
    b2 = _prep(bias.reshape(1, Cout), ((0, 0), (0, Cout_p - Cout)), jnp.float32)

    grid = (B, N_p // TM, N_p // TK)

    in_b = cdtype.itemsize
    out_b = jnp.dtype(out_dtype).itemsize
    # VMEM budget: double-buffered adj/out tiles, per-batch x slab, resident
    # W/bias (x2 in case invariant specs still double-buffer), f32 accumulator.
    est = (2 * TM * TK * in_b
           + 2 * N_p * Cin_p * in_b
           + 2 * TM * Cout_p * out_b
           + 2 * Cin_p * Cout_p * in_b
           + 2 * Cout_p * 4
           + TM * Cin_p * 4)
    vmem_limit = int(max(16 * 1024 * 1024, min(32 * 1024 * 1024, 2 * est)))

    cost = pl.CostEstimate(
        flops=2 * B * N_p * N_p * Cin_p + 2 * B * N_p * Cin_p * Cout_p,
        transcendentals=0,
        bytes_accessed=(B * N_p * N_p * in_b            # adj (dominant stream)
                        + B * N_p * Cin_p * in_b        # x (once per batch)
                        + Cin_p * Cout_p * in_b + Cout_p * 4
                        + B * N_p * Cout_p * out_b))    # output

    out_p = pl.pallas_call(
        functools.partial(_graph_conv_kernel, tk=TK),
        out_shape=jax.ShapeDtypeStruct((B, N_p, Cout_p), out_dtype),
        grid_spec=pltpu.PrefetchScalarGridSpec(
            num_scalar_prefetch=0,
            grid=grid,
            in_specs=[
                # adj[b, i*TM:(i+1)*TM, k*TK:(k+1)*TK] streamed tile-by-tile
                pl.BlockSpec((pl.Squeezed(), TM, TK), lambda b, i, k: (b, i, k)),
                # x[b] resident for the whole (i, k) sweep of this batch
                pl.BlockSpec((pl.Squeezed(), N_p, Cin_p), lambda b, i, k: (b, 0, 0)),
                # W^T and bias: shared / resident across the grid
                pl.BlockSpec((Cin_p, Cout_p), lambda b, i, k: (0, 0)),
                pl.BlockSpec((1, Cout_p), lambda b, i, k: (0, 0)),
            ],
            out_specs=pl.BlockSpec((pl.Squeezed(), TM, Cout_p),
                                   lambda b, i, k: (b, i, 0)),
            scratch_shapes=[pltpu.VMEM((TM, Cin_p), jnp.float32)],
        ),
        compiler_params=pltpu.CompilerParams(
            dimension_semantics=("parallel", "parallel", "arbitrary"),
            vmem_limit_bytes=vmem_limit,
        ),
        cost_estimate=cost,
    )(adj_p, x_p, w_t, b2)

    return out_p[:, :N, :Cout]


def graph_conv_ref(x, adj, weight, bias):
    # pure-JAX reference mirroring the PyTorch per-batch loop
    return jax.vmap(lambda a_i, x_i: jnp.matmul(a_i, x_i) @ weight.T + bias)(adj, x)


if __name__ == "__main__":
    key = jax.random.PRNGKey(0)
    k_x, k_adj, k_w, k_b = jax.random.split(key, 4)

    B, N, Cin, Cout = 2, 8, 16, 32
    x = jax.random.normal(k_x, (B, N, Cin), dtype=jnp.float32)
    adj = jax.random.uniform(k_adj, (B, N, N), dtype=jnp.float32)

    # deterministic "nn.Linear(in_channels, out_channels)"-style init
    bound = 1.0 / (Cin ** 0.5)
    weight = jax.random.uniform(k_w, (Cout, Cin), minval=-bound, maxval=bound,
                                dtype=jnp.float32)
    bias = jax.random.uniform(k_b, (Cout,), minval=-bound, maxval=bound,
                              dtype=jnp.float32)

    ref = graph_conv_ref(x, adj, weight, bias)

    gc_f32 = jax.jit(lambda xx, aa, ww, bb: graph_conv(xx, aa, ww, bb,
                                                       compute_dtype=jnp.float32))
    gc_bf16 = jax.jit(graph_conv)   # bf16 streaming default

    # f32 debug path — tight tolerance against the reference.
    out = jax.block_until_ready(gc_f32(x, adj, weight, bias))
    assert out.shape == (B, N, Cout)
    assert jnp.allclose(out, ref, atol=1e-5, rtol=1e-5)

    # Default bf16 path (halves the O(N^2) adj HBM stream; f32 accumulation).
    out_bf = jax.block_until_ready(gc_bf16(x, adj, weight, bias))
    rel = jnp.max(jnp.abs(out_bf - ref)) / (jnp.max(jnp.abs(ref)) + 1e-6)
    assert rel < 5e-2

    # Larger shape exercising row-tiling and the contraction (reduction) axis.
    B2, N2, Cin2, Cout2 = 2, 300, 48, 96
    k1, k2, k3, k4 = jax.random.split(jax.random.PRNGKey(1), 4)
    x2 = jax.random.normal(k1, (B2, N2, Cin2), dtype=jnp.float32)
    adj2 = jax.random.uniform(k2, (B2, N2, N2), dtype=jnp.float32)
    w2 = jax.random.normal(k3, (Cout2, Cin2), dtype=jnp.float32) * 0.05
    b2_ = jax.random.normal(k4, (Cout2,), dtype=jnp.float32) * 0.05
    ref2 = graph_conv_ref(x2, adj2, w2, b2_)

    out2 = jax.block_until_ready(gc_f32(x2, adj2, w2, b2_))
    assert out2.shape == (B2, N2, Cout2)
    assert jnp.allclose(out2, ref2, atol=1e-3, rtol=1e-3)

    out2_bf = jax.block_until_ready(gc_bf16(x2, adj2, w2, b2_))
    rel2 = jnp.max(jnp.abs(out2_bf - ref2)) / (jnp.max(jnp.abs(ref2)) + 1e-6)
    assert rel2 < 5e-2

    print("KERNEL_OK")
</pallas_src>

<mosaic_0001>
module attributes {stable_mosaic.version = 11 : i64} {
  func.func @_graph_conv_kernel(%arg0: i32, %arg1: i32, %arg2: i32, %arg3: memref<1x128x128xf32, #tpu.memory_space<vmem>>, %arg4: memref<1x128x128xf32, #tpu.memory_space<vmem>>, %arg5: memref<128x128xf32, #tpu.memory_space<vmem>>, %arg6: memref<1x128xf32, #tpu.memory_space<vmem>>, %arg7: memref<1x128x128xf32, #tpu.memory_space<vmem>>, %arg8: memref<128x128xf32, #tpu.memory_space<vmem>>) attributes {dimension_semantics = [#tpu.dimension_semantics<parallel>, #tpu.dimension_semantics<parallel>, #tpu.dimension_semantics<arbitrary>], iteration_bounds = array<i64: 2, 1, 1>, scalar_prefetch = 0 : i64, scratch_operands = 1 : i64, tpu.core_type = #tpu.core_type<tc>, window_params = [{transform_indices = @transform_0, window_bounds = array<i64: 1, 128, 128>}, {transform_indices = @transform_1, window_bounds = array<i64: 1, 128, 128>}, {pipeline_mode = #tpu.pipeline_mode<synchronous>, transform_indices = @transform_2, window_bounds = array<i64: 128, 128>}, {pipeline_mode = #tpu.pipeline_mode<synchronous>, transform_indices = @transform_3, window_bounds = array<i64: 1, 128>}, {transform_indices = @transform_4, window_bounds = array<i64: 1, 128, 128>}]} {
    %c0_i32 = arith.constant 0 : i32
    %0 = arith.cmpi eq, %arg2, %c0_i32 : i32
    %1 = arith.extui %0 : i1 to i32
    %c0_i32_0 = arith.constant 0 : i32
    %2 = arith.cmpi ne, %1, %c0_i32_0 : i32
    scf.if %2 {
      %cst_11 = arith.constant 0.000000e+00 : f32
      %17 = vector.broadcast %cst_11 : f32 to vector<128x128xf32>
      %c0_12 = arith.constant 0 : index
      %c0_13 = arith.constant 0 : index
      %18 = vector.load %arg8[%c0_12, %c0_13] : memref<128x128xf32, #tpu.memory_space<vmem>>, vector<128x128xf32>
      tpu.vector_store %arg8[%c0_12, %c0_13], %17 {strides = array<i32>} : memref<128x128xf32, #tpu.memory_space<vmem>>, vector<128x128xf32>,
    } else {
    }
    %c128_i32 = arith.constant 128 : i32
    %3 = arith.muli %arg2, %c128_i32 : i32
    %4 = tpu.assume_multiple %3, 128 : i32
    %c0 = arith.constant 0 : index
    %5 = arith.index_cast %4 : i32 to index
    %c0_1 = arith.constant 0 : index
    %6 = vector.load %arg4[%c0, %5, %c0_1] : memref<1x128x128xf32, #tpu.memory_space<vmem>>, vector<1x128x128xf32>
    %7 = vector.shape_cast %6 : vector<1x128x128xf32> to vector<128x128xf32>
    %c0_2 = arith.constant 0 : index
    %c0_3 = arith.constant 0 : index
    %8 = vector.load %arg8[%c0_2, %c0_3] : memref<128x128xf32, #tpu.memory_space<vmem>>, vector<128x128xf32>
    %c0_4 = arith.constant 0 : index
    %c0_5 = arith.constant 0 : index
    %c0_6 = arith.constant 0 : index
    %9 = vector.load %arg3[%c0_4, %c0_5, %c0_6] : memref<1x128x128xf32, #tpu.memory_space<vmem>>, vector<1x128x128xf32>
    %10 = vector.shape_cast %9 : vector<1x128x128xf32> to vector<128x128xf32>
    %cst = arith.constant dense<0.000000e+00> : vector<128x128xf32>
    %11 = tpu.matmul %10, %7, %cst {dimension_numbers = #tpu.dot_dimension_numbers<[1], [0], [0], [1], [0, 0, 1, 1], [], []>} : vector<128x128xf32>, vector<128x128xf32>, vector<128x128xf32> -> vector<128x128xf32>
    %12 = arith.addf %8, %11 : vector<128x128xf32>
    %c0_7 = arith.constant 0 : index
    %c0_8 = arith.constant 0 : index
    %13 = vector.load %arg8[%c0_7, %c0_8] : memref<128x128xf32, #tpu.memory_space<vmem>>, vector<128x128xf32>
    tpu.vector_store %arg8[%c0_7, %c0_8], %12 {strides = array<i32>} : memref<128x128xf32, #tpu.memory_space<vmem>>, vector<128x128xf32>,
    %c0_i32_9 = arith.constant 0 : i32
    %14 = arith.cmpi eq, %arg2, %c0_i32_9 : i32
    %15 = arith.extui %14 : i1 to i32
    %c0_i32_10 = arith.constant 0 : i32
    %16 = arith.cmpi ne, %15, %c0_i32_10 : i32
    scf.if %16 {
      %c0_11 = arith.constant 0 : index
      %c0_12 = arith.constant 0 : index
      %17 = vector.load %arg8[%c0_11, %c0_12] : memref<128x128xf32, #tpu.memory_space<vmem>>, vector<128x128xf32>
      %c0_13 = arith.constant 0 : index
      %c0_14 = arith.constant 0 : index
      %18 = vector.load %arg5[%c0_13, %c0_14] : memref<128x128xf32, #tpu.memory_space<vmem>>, vector<128x128xf32>
      %cst_15 = arith.constant dense<0.000000e+00> : vector<128x128xf32>
      %19 = tpu.matmul %17, %18, %cst_15 {dimension_numbers = #tpu.dot_dimension_numbers<[1], [0], [0], [1], [0, 0, 1, 1], [], []>} : vector<128x128xf32>, vector<128x128xf32>, vector<128x128xf32> -> vector<128x128xf32>
      %c0_16 = arith.constant 0 : index
      %c0_17 = arith.constant 0 : index
      %20 = vector.load %arg6[%c0_16, %c0_17] : memref<1x128xf32, #tpu.memory_space<vmem>>, vector<1x128xf32>
      %21 = vector.broadcast %20 : vector<1x128xf32> to vector<128x128xf32>
      %22 = arith.addf %19, %21 : vector<128x128xf32>
      %c0_18 = arith.constant 0 : index
      %c0_19 = arith.constant 0 : index
      %c0_20 = arith.constant 0 : index
      %23 = vector.load %arg7[%c0_18, %c0_19, %c0_20] : memref<1x128x128xf32, #tpu.memory_space<vmem>>, vector<1x128x128xf32>
      %24 = vector.shape_cast %23 : vector<1x128x128xf32> to vector<128x128xf32>
      %25 = vector.shape_cast %22 : vector<128x128xf32> to vector<1x128x128xf32>
      tpu.vector_store %arg7[%c0_18, %c0_19, %c0_20], %25 {strides = array<i32>} : memref<1x128x128xf32, #tpu.memory_space<vmem>>, vector<1x128x128xf32>,
    } else {
    }
    return
  }
  func.func @transform_0(%arg0: i32, %arg1: i32, %arg2: i32) -> (i32, i32, i32) {
    %c0_i32 = arith.constant 0 : i32
    return %arg0, %arg1, %arg2 : i32, i32, i32
  }
  func.func @transform_1(%arg0: i32, %arg1: i32, %arg2: i32) -> (i32, i32, i32) {
    %c0_i32 = arith.constant 0 : i32
    %c0_i32_0 = arith.constant 0 : i32
    %c0_i32_1 = arith.constant 0 : i32
    return %arg0, %c0_i32, %c0_i32_0 : i32, i32, i32
  }
  func.func @transform_2(%arg0: i32, %arg1: i32, %arg2: i32) -> (i32, i32) {
    %c0_i32 = arith.constant 0 : i32
    %c0_i32_0 = arith.constant 0 : i32
    %c0_i32_1 = arith.constant 0 : i32
    return %c0_i32, %c0_i32_0 : i32, i32
  }
  func.func @transform_3(%arg0: i32, %arg1: i32, %arg2: i32) -> (i32, i32) {
    %c0_i32 = arith.constant 0 : i32
    %c0_i32_0 = arith.constant 0 : i32
    %c0_i32_1 = arith.constant 0 : i32
    return %c0_i32, %c0_i32_0 : i32, i32
  }
  func.func @transform_4(%arg0: i32, %arg1: i32, %arg2: i32) -> (i32, i32, i32) {
    %c0_i32 = arith.constant 0 : i32
    %c0_i32_0 = arith.constant 0 : i32
    return %arg0, %arg1, %c0_i32 : i32, i32, i32
  }
}

</mosaic_0001>

<bundles_post_ra>
// kernel: _lambda_.1
= control target key start
LH: loop header
LB: loop body
LE: loop exit
PB: predicated region body
PF: predicated region fallthrough
CT: control target
= control target key end

     0   :  { %s1098_s15 = smov 0   ;;  %s1100_s16 = smov 0   ;;  %s1244_s0 = inlined_call_operand.vmem [shape: f32[2,128,128], index: 0, kind: input, shape index: {}]   ;;  %s1245_s1 = inlined_call_operand.vmem [shape: f32[2,128,128], index: 1, kind: input, shape index: {}]   ;;  %s1246_s2 = inlined_call_operand.vmem [shape: f32[128,128], index: 2, kind: input, shape index: {}]   ;;  %s1247_s3 = inlined_call_operand.vmem [shape: f32[1,128], index: 3, kind: input, shape index: {}]   ;;  %s1248_s4 = inlined_call_operand.vmem [shape: f32[2,128,128], index: 4, kind: output, shape index: {}]  }
   0x1   :  { %s1102_s17 = smov 0  }
   0x2 LB: > { %s33_s18 = sadd.s32 1, %s1067_s16  ;;  %p836_p0 = scmp.ge.s32.totalorder %s1071_s17, 1  ;;  %s1071_s17 = sphi %s1102_s17, %s14_s17   ;;  %s1067_s16 = sphi %s1100_s16, %s1250_s16   ;;  %s1063_s15 = sphi %s1098_s15, %s1249_s15  }
   0x3   : > { %p35_p1 = scmp.ge.s32.totalorder %s33_s18, 2  ;;  %p205_p2 = scmp.lt.s32.totalorder %s1071_s17, 3 }
   0x5   : > { %s1252_s18 = smov (%p35_p1, %s33_s18), 0  ;;  %p206_p3 = pnand %p836_p0, %p205_p2 }
   0x6   : > { %p248_p4 = scmp.lt.s32.totalorder (!%p206_p3), %s1063_s15, 1 }
   0x7   : > { %209 = sbr.rel (%p206_p3) target bundleno = 471 (0x1d7), region = 36 }
   0xc   : > { %v556_v0 = vld [vmem:[%s1246_s2 + $0x78] sm:$0xff]  ;;  %v555_v1 = vld [vmem:[%s1246_s2 + $0x70] sm:$0xff]  ;;  %s1254_s15 = smov (!%p248_p4, %s1063_s15), 1  ;;  %v554_v2 = vld [vmem:[%s1246_s2 + $0x68] sm:$0xff] }
   0xd   : > { %969 = vmatprep.subr.mxu1 %v556_v0  ;;  %s1125_s25 = sshll.u32 %s1254_s15, 7  ;;  %v553_v3 = vld [vmem:[%s1246_s2 + $0x60] sm:$0xff]  ;;  %v552_v6 = vld [vmem:[%s1246_s2 + $0x58] sm:$0xff]  ;;  %v551_v8 = vld [vmem:[%s1246_s2 + $0x50] sm:$0xff] }
   0xe   : > { %970 = vmatpush3.msra.mxu1 %v556_v0  ;;  %s1134_s30 = scalar_lea.vmem %s1245_s1, %s1125_s25  ;;  %s1146_s9 = scalar_lea.vmem %s1244_s0, %s1125_s25  ;;  %v550_v11 = vld [vmem:[%s1246_s2 + $0x48] sm:$0xff]  ;;  %v549_v13 = vld [vmem:[%s1246_s2 + $0x40] sm:$0xff]  ;;  %v548_v15 = vld [vmem:[%s1246_s2 + $0x38] sm:$0xff] }
   0xf   : > { %971 = vmatprep.subr.mxu1 %v555_v1  ;;  %v312_v4 = vld [vmem:[%s1134_s30 + $0x78] sm:$0xff]  ;;  %v311_v5 = vld [vmem:[%s1134_s30 + $0x70] sm:$0xff]  ;;  %v310_v7 = vld [vmem:[%s1134_s30 + $0x68] sm:$0xff]  ;;  %s1217_s14 = scalar_lea.vmem %s1248_s4, %s1125_s25 }
  0x10   : > { %972 = vmatpush3.msra.mxu1 %v555_v1  ;;  %913 = vmatprep.subr.mxu0 %v312_v4  ;;  %v309_v9 = vld [vmem:[%s1134_s30 + $0x60] sm:$0xff]  ;;  %v308_v12 = vld [vmem:[%s1134_s30 + $0x58] sm:$0xff]  ;;  %v307_v14 = vld [vmem:[%s1134_s30 + $0x50] sm:$0xff] }
  0x11   : > { %973 = vmatprep.subr.mxu1 %v554_v2  ;;  %914 = vmatpush3.msra.mxu0 %v312_v4  ;;  %v329_v10 = vld [vmem:[%s1146_s9] sm:$0xff]  ;;  %v306_v16 = vld [vmem:[%s1134_s30 + $0x48] sm:$0xff]  ;;  %v547_v17 = vld [vmem:[%s1246_s2 + $0x30] sm:$0xff] }
  0x12   : > { %974 = vmatpush3.msra.mxu1 %v554_v2  ;;  %915 = vmatprep.subr.mxu0 %v311_v5  ;;  %v305_v18 = vld [vmem:[%s1134_s30 + $0x40] sm:$0xff]  ;;  %v546_v19 = vld [vmem:[%s1246_s2 + $0x28] sm:$0xff]  ;;  %v304_v20 = vld [vmem:[%s1134_s30 + $0x38] sm:$0xff] }
  0x13   : > { %975 = vmatprep.subr.mxu1 %v553_v3  ;;  %916 = vmatpush3.msra.mxu0 %v311_v5  ;;  %v545_v21 = vld [vmem:[%s1246_s2 + $0x20] sm:$0xff]  ;;  %v303_v22 = vld [vmem:[%s1134_s30 + $0x30] sm:$0xff]  ;;  %v544_v23 = vld [vmem:[%s1246_s2 + $0x18] sm:$0xff] }
  0x14   : > { %976 = vmatpush3.msra.mxu1 %v553_v3  ;;  %917 = vmatprep.subr.mxu0 %v310_v7  ;;  %v302_v24 = vld [vmem:[%s1134_s30 + $0x28] sm:$0xff]  ;;  %v543_v25 = vld [vmem:[%s1246_s2 + $0x10] sm:$0xff]  ;;  %v301_v26 = vld [vmem:[%s1134_s30 + $0x20] sm:$0xff] }
  0x15   : > { %977 = vmatprep.subr.mxu1 %v552_v6  ;;  %918 = vmatpush3.msra.mxu0 %v310_v7  ;;  %v300_v27 = vld [vmem:[%s1134_s30 + $0x18] sm:$0xff]  ;;  %v299_v28 = vld [vmem:[%s1134_s30 + $0x10] sm:$0xff]  ;;  %v298_v29 = vld [vmem:[%s1134_s30 + $0x8] sm:$0xff] }
  0x16   : > { %978 = vmatpush3.msra.mxu1 %v552_v6  ;;  %945 = vmatprep.mubr.f32.mxu0 %v329_v10  ;;  %v297_v30 = vld [vmem:[%s1134_s30] sm:$0xff]  ;;  %v330_v31 = vld [vmem:[%s1146_s9 + $0x8] sm:$0xff]  ;;  %v331_v32 = vld [vmem:[%s1146_s9 + $0x10] sm:$0xff] }
  0x17   : > { %979 = vmatprep.subr.mxu1 %v551_v8  ;;  %919 = vmatprep.subr.mxu0 %v309_v9  ;;  %v332_v33 = vld [vmem:[%s1146_s9 + $0x18] sm:$0xff]  ;;  %v333_v34 = vld [vmem:[%s1146_s9 + $0x20] sm:$0xff]  ;;  %v334_v35 = vld [vmem:[%s1146_s9 + $0x28] sm:$0xff] }
  0x18   : > { %980 = vmatpush3.msra.mxu1 %v551_v8  ;;  %920 = vmatpush3.msra.mxu0 %v309_v9  ;;  %v335_v36 = vld [vmem:[%s1146_s9 + $0x30] sm:$0xff]  ;;  %v336_v37 = vld [vmem:[%s1146_s9 + $0x38] sm:$0xff]  ;;  %v337_v38 = vld [vmem:[%s1146_s9 + $0x40] sm:$0xff] }
  0x19   : > { %981 = vmatprep.subr.mxu1 %v550_v11  ;;  %921 = vmatprep.subr.mxu0 %v308_v12  ;;  %v338_v39 = vld [vmem:[%s1146_s9 + $0x48] sm:$0xff]  ;;  %v339_v40 = vld [vmem:[%s1146_s9 + $0x50] sm:$0xff]  ;;  %v340_v41 = vld [vmem:[%s1146_s9 + $0x58] sm:$0xff] }
  0x1a   : > { %982 = vmatpush3.msra.mxu1 %v550_v11  ;;  %922 = vmatpush3.msra.mxu0 %v308_v12  ;;  %v341_v42 = vld [vmem:[%s1146_s9 + $0x60] sm:$0xff]  ;;  %v342_v43 = vld [vmem:[%s1146_s9 + $0x68] sm:$0xff]  ;;  %v343_v44 = vld [vmem:[%s1146_s9 + $0x70] sm:$0xff] }
  0x1b   : > { %983 = vmatprep.subr.mxu1 %v549_v13  ;;  %923 = vmatprep.subr.mxu0 %v307_v14  ;;  %v344_v45 = vld [vmem:[%s1146_s9 + $0x78] sm:$0xff]  ;;  %v542_v46 = vld [vmem:[%s1246_s2 + $0x8] sm:$0xff]  ;;  %v541_v47 = vld [vmem:[%s1246_s2] sm:$0xff] }
  0x1c   : > { %984 = vmatpush3.msra.mxu1 %v549_v13  ;;  %924 = vmatpush3.msra.mxu0 %v307_v14  ;;  %v843_v0 = vld [vmem:[%s1247_s3] ss:$0 sm:$0xff] }
  0x1d   : > { %985 = vmatprep.subr.mxu1 %v548_v15  ;;  %925 = vmatprep.subr.mxu0 %v306_v16 }
  0x1e   : > { %986 = vmatpush3.msra.mxu1 %v548_v15  ;;  %926 = vmatpush3.msra.mxu0 %v306_v16 }
  0x1f   : > { %987 = vmatprep.subr.mxu1 %v547_v17  ;;  %927 = vmatprep.subr.mxu0 %v305_v18 }
  0x20   : > { %988 = vmatpush3.msra.mxu1 %v547_v17  ;;  %928 = vmatpush3.msra.mxu0 %v305_v18 }
  0x21   : > { %989 = vmatprep.subr.mxu1 %v546_v19  ;;  %929 = vmatprep.subr.mxu0 %v304_v20 }
  0x22   : > { %990 = vmatpush3.msra.mxu1 %v546_v19  ;;  %930 = vmatpush3.msra.mxu0 %v304_v20 }
  0x23   : > { %991 = vmatprep.subr.mxu1 %v545_v21  ;;  %931 = vmatprep.subr.mxu0 %v303_v22 }
  0x24   : > { %992 = vmatpush3.msra.mxu1 %v545_v21  ;;  %932 = vmatpush3.msra.mxu0 %v303_v22 }
  0x25   : > { %993 = vmatprep.subr.mxu1 %v544_v23  ;;  %933 = vmatprep.subr.mxu0 %v302_v24 }
  0x26   : > { %994 = vmatpush3.msra.mxu1 %v544_v23  ;;  %934 = vmatpush3.msra.mxu0 %v302_v24 }
  0x27   : > { %995 = vmatprep.subr.mxu1 %v543_v25  ;;  %935 = vmatprep.subr.mxu0 %v301_v26 }
  0x28   : > { %996 = vmatpush3.msra.mxu1 %v543_v25  ;;  %936 = vmatpush3.msra.mxu0 %v301_v26 }
  0x29   : > { %937 = vmatprep.subr.mxu0 %v300_v27  ;;  %997 = vmatprep.subr.mxu1 %v542_v46 }
  0x2a   : > { %938 = vmatpush3.msra.mxu0 %v300_v27  ;;  %998 = vmatpush3.msra.mxu1 %v542_v46 }
  0x2b   : > { %939 = vmatprep.subr.mxu0 %v299_v28  ;;  %999 = vmatprep.subr.mxu1 %v541_v47 }
  0x2c   : > { %940 = vmatpush3.msra.mxu0 %v299_v28  ;;  %1000 = vmatpush3.msra.mxu1 %v541_v47 }
  0x2d   : > { %941 = vmatprep.subr.mxu0 %v298_v29 }
  0x2e   : > { %942 = vmatpush3.msra.mxu0 %v298_v29 }
  0x2f   : > { %943 = vmatprep.subr.mxu0 %v297_v30 }
  0x30   : > { %944 = vmatpush3.msra.mxu0 %v297_v30 }
  0x31   : > { %946 = vmatmul.mubr.f32.vlgmr.msra.gmra.mxu0 %v330_v31 }
  0x32   : > { %948 = vmatprep.mubr.f32.mxu0 %v331_v32 }
  0x35   : > { %949 = vmatmul.mubr.f32.gmra.mxu0 %v332_v33 }
  0x36   : > { %951 = vmatprep.mubr.f32.mxu0 %v333_v34 }
  0x39   : > { %952 = vmatmul.mubr.f32.gmra.mxu0 %v334_v35 }
  0x3a   : > { %954 = vmatprep.mubr.f32.mxu0 %v335_v36 }
  0x3d   : > { %955 = vmatmul.mubr.f32.gmra.mxu0 %v336_v37 }
  0x3e   : > { %957 = vmatprep.mubr.f32.mxu0 %v337_v38 }
  0x41   : > { %958 = vmatmul.mubr.f32.gmra.mxu0 %v338_v39 }
  0x42   : > { %960 = vmatprep.mubr.f32.mxu0 %v339_v40 }
  0x45   : > { %961 = vmatmul.mubr.f32.gmra.mxu0 %v340_v41 }
  0x46   : > { %963 = vmatprep.mubr.f32.mxu0 %v341_v42 }
  0x49   : > { %964 = vmatmul.mubr.f32.gmra.mxu0 %v342_v43 }
  0x4a   : > { %966 = vmatprep.mubr.f32.mxu0 %v343_v44 }
  0x4d   : > { %967 = vmatmul.mubr.f32.gmra.mxu0 %v344_v45 }
  0xf1   : > { %v947_v48 = vpop.f32.mrf.mxu0 }
  0xf3   : > { %v411_v49 = vpop.f32.mrf.mxu0 }
  0xf4   : > { %1001 = vmatprep.mubr.f32.mxu1 %v411_v49 }
  0xf5   : > { %v950_v50 = vpop.f32.mrf.mxu0  ;;  %1002 = vmatmul.mubr.f32.vlgmr.msra.gmra.mxu1 %v947_v48 }
  0xf7   : > { %v421_v51 = vpop.f32.mrf.mxu0 }
  0xf8   : > { %1004 = vmatprep.mubr.f32.mxu1 %v421_v51 }
  0xf9   : > { %v953_v52 = vpop.f32.mrf.mxu0  ;;  %1005 = vmatmul.mubr.f32.gmra.mxu1 %v950_v50 }
  0xfb   : > { %v431_v53 = vpop.f32.mrf.mxu0 }
  0xfc   : > { %1007 = vmatprep.mubr.f32.mxu1 %v431_v53 }
  0xfd   : > { %v956_v54 = vpop.f32.mrf.mxu0  ;;  %1008 = vmatmul.mubr.f32.gmra.mxu1 %v953_v52 }
  0xff   : > { %v441_v55 = vpop.f32.mrf.mxu0 }
 0x100   : > { %1010 = vmatprep.mubr.f32.mxu1 %v441_v55 }
 0x101   : > { %v959_v56 = vpop.f32.mrf.mxu0  ;;  %1011 = vmatmul.mubr.f32.gmra.mxu1 %v956_v54 }
 0x103   : > { %v451_v57 = vpop.f32.mrf.mxu0 }
 0x104   : > { %1013 = vmatprep.mubr.f32.mxu1 %v451_v57 }
 0x105   : > { %v962_v58 = vpop.f32.mrf.mxu0  ;;  %1014 = vmatmul.mubr.f32.gmra.mxu1 %v959_v56 }
 0x107   : > { %v461_v59 = vpop.f32.mrf.mxu0 }
 0x108   : > { %1016 = vmatprep.mubr.f32.mxu1 %v461_v59 }
 0x109   : > { %v965_v60 = vpop.f32.mrf.mxu0  ;;  %1017 = vmatmul.mubr.f32.gmra.mxu1 %v962_v58 }
 0x10b   : > { %v471_v61 = vpop.f32.mrf.mxu0 }
 0x10c   : > { %1019 = vmatprep.mubr.f32.mxu1 %v471_v61 }
 0x10d   : > { %v968_v62 = vpop.f32.mrf.mxu0  ;;  %1020 = vmatmul.mubr.f32.gmra.mxu1 %v965_v60 }
 0x10f   : > { %v481_v63 = vpop.f32.mrf.mxu0 }
 0x110   : > { %1022 = vmatprep.mubr.f32.mxu1 %v481_v63 }
 0x111   : > { %1023 = vmatmul.mubr.f32.gmra.mxu1 %v968_v62 }
 0x1b5   : > { %v1003_v1 = vpop.f32.mrf.mxu1 }
 0x1b6   : > { %v636_v2 = vadd.f32 %v1003_v1, %v843_v0 }
 0x1b7   : > { %v630_v3 = vpop.f32.mrf.mxu1 }
 0x1b8   : > { %710 = vst [vmem:[%s1217_s14 + $0x8] sm:$0xff] %v636_v2  ;;  %v631_v4 = vadd.f32 %v843_v0, %v630_v3 }
 0x1b9   : > { %v1006_v5 = vpop.f32.mrf.mxu1 }
 0x1ba   : > { %709 = vst [vmem:[%s1217_s14] sm:$0xff] %v631_v4  ;;  %v646_v6 = vadd.f32 %v1006_v5, %v843_v0 }
 0x1bb   : > { %v640_v7 = vpop.f32.mrf.mxu1 }
 0x1bc   : > { %712 = vst [vmem:[%s1217_s14 + $0x18] sm:$0xff] %v646_v6  ;;  %v641_v8 = vadd.f32 %v843_v0, %v640_v7 }
 0x1bd   : > { %v1009_v9 = vpop.f32.mrf.mxu1 }
 0x1be   : > { %711 = vst [vmem:[%s1217_s14 + $0x10] sm:$0xff] %v641_v8  ;;  %v656_v10 = vadd.f32 %v1009_v9, %v843_v0 }
 0x1bf   : > { %v650_v11 = vpop.f32.mrf.mxu1 }
 0x1c0   : > { %714 = vst [vmem:[%s1217_s14 + $0x28] sm:$0xff] %v656_v10  ;;  %v651_v12 = vadd.f32 %v843_v0, %v650_v11 }
 0x1c1   : > { %v1012_v13 = vpop.f32.mrf.mxu1 }
 0x1c2   : > { %713 = vst [vmem:[%s1217_s14 + $0x20] sm:$0xff] %v651_v12  ;;  %v666_v14 = vadd.f32 %v1012_v13, %v843_v0 }
 0x1c3   : > { %v660_v15 = vpop.f32.mrf.mxu1 }
 0x1c4   : > { %716 = vst [vmem:[%s1217_s14 + $0x38] sm:$0xff] %v666_v14  ;;  %v661_v16 = vadd.f32 %v843_v0, %v660_v15 }
 0x1c5   : > { %v1015_v17 = vpop.f32.mrf.mxu1 }
 0x1c6   : > { %715 = vst [vmem:[%s1217_s14 + $0x30] sm:$0xff] %v661_v16  ;;  %v676_v18 = vadd.f32 %v1015_v17, %v843_v0 }
 0x1c7   : > { %v670_v19 = vpop.f32.mrf.mxu1 }
 0x1c8   : > { %718 = vst [vmem:[%s1217_s14 + $0x48] sm:$0xff] %v676_v18  ;;  %v671_v20 = vadd.f32 %v843_v0, %v670_v19 }
 0x1c9   : > { %v1018_v21 = vpop.f32.mrf.mxu1 }
 0x1ca   : > { %717 = vst [vmem:[%s1217_s14 + $0x40] sm:$0xff] %v671_v20  ;;  %v686_v22 = vadd.f32 %v1018_v21, %v843_v0 }
 0x1cb   : > { %v680_v23 = vpop.f32.mrf.mxu1 }
 0x1cc   : > { %720 = vst [vmem:[%s1217_s14 + $0x58] sm:$0xff] %v686_v22  ;;  %v681_v24 = vadd.f32 %v843_v0, %v680_v23 }
 0x1cd   : > { %v1021_v25 = vpop.f32.mrf.mxu1 }
 0x1ce   : > { %719 = vst [vmem:[%s1217_s14 + $0x50] sm:$0xff] %v681_v24  ;;  %v696_v26 = vadd.f32 %v1021_v25, %v843_v0 }
 0x1cf   : > { %v690_v27 = vpop.f32.mrf.mxu1 }
 0x1d0   : > { %722 = vst [vmem:[%s1217_s14 + $0x68] sm:$0xff] %v696_v26  ;;  %v691_v28 = vadd.f32 %v843_v0, %v690_v27 }
 0x1d1   : > { %v1024_v29 = vpop.f32.mrf.mxu1 }
 0x1d2   : > { %721 = vst [vmem:[%s1217_s14 + $0x60] sm:$0xff] %v691_v28  ;;  %v706_v30 = vadd.f32 %v1024_v29, %v843_v0 }
 0x1d3   : > { %v700_v31 = vpop.f32.mrf.mxu1 }
 0x1d4   : > { %724 = vst [vmem:[%s1217_s14 + $0x78] sm:$0xff] %v706_v30  ;;  %v701_v32 = vadd.f32 %v843_v0, %v700_v31 }
 0x1d6   : > { %723 = vst [vmem:[%s1217_s14 + $0x70] sm:$0xff] %v701_v32 }
 0x1d7 PF: > { %s14_s17 = sadd.s32 1, %s1071_s17   ;;  %s1249_s15 = smov %s1067_s16 }
 0x1d8   : > { %p11_p5 = scmp.ge.s32.totalorder %s14_s17, 4   ;;  %s1250_s16 = smov %s1252_s18 }
 0x1da   :  { %13 = sbr.rel (!%p11_p5) target bundleno = 2 (0x2), region = 78 }

</bundles_post_ra>
